<compile_context>
chip_gen: v7x
topology: tpu7x:2x2x1
jax: 0.10.0
libtpu: 0.0.40
codegen_flags: <defaults>
</compile_context>

<pallas_src>
import jax
import jax.numpy as jnp
from jax.experimental import pallas as pl
from jax.experimental.pallas import tpu as pltpu


def _round_up(v, m):
    return -(-v // m) * m


# ----------------------------------------------------------------------------
# Pallas kernel: box conversion + score*objectness, lane-dense transposed out
# ----------------------------------------------------------------------------
def _preproc_kernel(x_ref, box_ref, score_ref):
    """One (batch, anchor-tile) grid step.

    x_ref:     (1, TA, C)  input tile, native dtype (C = 5 + num_classes)
    box_ref:   (1, 4,  TA) lane-dense x1,y1,x2,y2 (f32)
    score_ref: (1, NC, TA) lane-dense class_score * objectness
    """
    # Transpose in the native dtype (no full-tile f32 temporary; halves XLU
    # traffic for bf16 inputs), then cast only the rows that are used.
    xt = x_ref[0].T                                    # (C, TA)

    xy = xt[0:2, :].astype(jnp.float32)                # (2, TA): cx, cy
    half = xt[2:4, :].astype(jnp.float32) * 0.5        # (2, TA): w/2, h/2
    conf = xt[4:5, :].astype(jnp.float32)              # (1, TA): objectness
    cls = xt[5:, :].astype(jnp.float32)                # (NC, TA)

    # Box conversion ((cx,cy,w,h) -> (x1,y1,x2,y2)) on the VPU, equivalent to
    # the reference module's 4x4 convert-matrix matmul.  Two contiguous 2-row
    # stores instead of a 4-way sublane concat.
    box_ref[0, 0:2, :] = xy - half                     # x1, y1
    box_ref[0, 2:4, :] = xy + half                     # x2, y2

    # Objectness broadcast across classes: sublane-row broadcast, VPU only.
    score_ref[0] = (cls * conf).astype(score_ref.dtype)


# ----------------------------------------------------------------------------
# Tiling plan + wrapper
# ----------------------------------------------------------------------------
def _plan_anchor_tiling(A, max_tile=1024, min_tile=512):
    """Choose (TA, A_pad).

    TA must be a multiple of 128 (it becomes the lane dim of the outputs);
    A_pad is the smallest multiple of TA >= A.  Preference order: >=2 anchor
    grid steps (DMA-pipeline overlap + work for both of v7x's TensorCores
    under "parallel" semantics), minimal padding, then the biggest tile.
    """
    a128 = _round_up(A, 128)
    if a128 <= max_tile:
        # Small head: split into two tiles when possible, otherwise one.
        ta = _round_up(max(a128 // 2, 128), 128) if a128 > 128 else 128
        return ta, _round_up(A, ta)
    best = None
    for ta in range(min_tile, max_tile + 1, 128):
        a_pad = _round_up(A, ta)
        key = (a_pad, -ta)                  # least padding, then biggest tile
        if best is None or key < best[0]:
            best = (key, ta, a_pad)
    return best[1], best[2]


def preprocess(x, *, max_tile=1024, score_dtype=jnp.float32):
    """x: (B, A, 5+NC) -> (nms_box_t (B,4,A) f32, nms_score (B,NC,A) score_dtype).

    Outputs are lane-dense (anchors last).  score_dtype=jnp.bfloat16 roughly
    halves HBM writeback for large-NC heads (scores in [0,1] are bf16-safe);
    the float32 default matches the reference module exactly.
    """
    B, A, C = x.shape
    NC = C - 5
    TA, A_pad = _plan_anchor_tiling(A, max_tile=max_tile)

    if A_pad != A:
        # Pad the anchor axis so every tile (and every lane-dense output
        # block) is full — realistic anchor counts are not multiples of 128.
        # TODO(synk): if the producer emits A as a multiple of 128 (or once a
        # masked tail tile is adopted) this pad copy disappears.
        x = jnp.pad(x, ((0, 0), (0, A_pad - A), (0, 0)))

    grid = (B, A_pad // TA)

    # VMEM budget from the lane-/sublane-padded footprint, double-buffered.
    in_bytes = TA * _round_up(C, 128) * x.dtype.itemsize
    box_bytes = _round_up(4, 8) * TA * 4
    score_bytes = _round_up(max(NC, 1), 8) * TA * jnp.dtype(score_dtype).itemsize
    vmem_limit = int(min(max(2 * (in_bytes + box_bytes + score_bytes) + (4 << 20),
                             16 << 20), 32 << 20))

    box_t, score = pl.pallas_call(
        _preproc_kernel,
        out_shape=(
            jax.ShapeDtypeStruct((B, 4, A_pad), jnp.float32),
            jax.ShapeDtypeStruct((B, NC, A_pad), score_dtype),
        ),
        grid_spec=pltpu.PrefetchScalarGridSpec(
            num_scalar_prefetch=0,
            grid=grid,
            in_specs=[
                pl.BlockSpec((1, TA, C), lambda b, a: (b, a, 0)),
            ],
            out_specs=[
                pl.BlockSpec((1, 4, TA), lambda b, a: (b, 0, a)),
                pl.BlockSpec((1, NC, TA), lambda b, a: (b, 0, a)),
            ],
        ),
        compiler_params=pltpu.CompilerParams(
            dimension_semantics=("parallel", "parallel"),
            vmem_limit_bytes=vmem_limit,
        ),
    )(x)  # native dtype in — the f32 cast happens inside the kernel

    if A_pad != A:
        # Slices fuse into the downstream 10-element gathers (no extra copy).
        box_t = box_t[:, :, :A]
        score = score[:, :, :A]
    return box_t, score


# ----------------------------------------------------------------------------
# ORT_NMS stand-in.
# The reference torch forward of ORT_NMS does NOT do real NMS: it emits random
# placeholder indices (the real op only exists in the exported ONNX graph).
# We reproduce that behaviour deterministically.
# ----------------------------------------------------------------------------
def ort_nms_stub(nms_box_t, nms_score, key, num_det=10):
    # TODO(synk): real NonMaxSuppression (ONNX-Runtime op) has no Pallas
    # equivalent; the reference forward returns random placeholder indices,
    # reproduced here deterministically.
    batch = nms_score.shape[0]
    batches = jnp.sort(
        jax.random.randint(key, (num_det,), 0, batch, dtype=jnp.int32)
    )
    zeros = jnp.zeros((num_det,), dtype=jnp.int32)
    idxs = jnp.arange(100, 100 + num_det, dtype=jnp.int32)
    # selected_indices: (num_det, 3) = [batch_idx, class_idx, box_idx]
    return jnp.stack([batches, zeros, idxs], axis=1)


# ----------------------------------------------------------------------------
# Full ONNX_ORT.forward equivalent
# ----------------------------------------------------------------------------
def onnx_ort_forward(x, nms_key, max_obj=100, iou_thres=0.45, score_thres=0.25):
    batch, anchors, _ = x.shape
    # Guard: the placeholder NMS emits box indices 100..109; smaller anchor
    # counts would silently clamp in the gather below.
    assert anchors >= 110, "anchors must be >= 110 for the ORT_NMS placeholder"

    # --- hot path in Pallas kernel (already lane-dense / pre-transposed) ---
    nms_box_t, nms_score = preprocess(x)      # (B,4,A), (B,NC,A)

    # --- placeholder NMS (see stub above) ---
    selected_indices = ort_nms_stub(nms_box_t, nms_score, nms_key)
    batch_inds = selected_indices[:, 0]
    cls_inds = selected_indices[:, 1]
    box_inds = selected_indices[:, 2]

    # --- gather selected detections ---
    selected_score = nms_score[batch_inds, cls_inds, box_inds][:, None]   # (nd,1)
    selected_box = nms_box_t[batch_inds, :, box_inds]                     # (nd,4)
    dets = jnp.concatenate(
        [selected_box, selected_score.astype(selected_box.dtype)], axis=1)  # (nd,5)

    batched_dets = jnp.tile(dets[None], (batch, 1, 1))                    # (B,nd,5)
    batch_template = jnp.arange(batch, dtype=batch_inds.dtype)
    mask = batch_inds[None, :] == batch_template[:, None]                 # (B,nd)
    batched_dets = jnp.where(mask[..., None], batched_dets, 0.0)

    batched_labels = jnp.tile(cls_inds[None], (batch, 1))                 # (B,nd)
    batched_labels = jnp.where(mask, batched_labels, -1)

    N = batched_dets.shape[0]
    batched_dets = jnp.concatenate(
        [batched_dets, jnp.zeros((N, 1, 5), batched_dets.dtype)], axis=1)
    batched_labels = jnp.concatenate(
        [batched_labels, -jnp.ones((N, 1), batched_labels.dtype)], axis=1)

    # sort by score (last column), descending
    topk_inds = jnp.argsort(-batched_dets[:, :, -1], axis=1)
    topk_batch_inds = jnp.arange(batch, dtype=topk_inds.dtype)[:, None]
    batched_dets = batched_dets[topk_batch_inds, topk_inds]
    det_classes = batched_labels[topk_batch_inds, topk_inds]

    det_boxes = batched_dets[..., :4]
    det_scores = batched_dets[..., 4]
    num_det = (det_scores > 0).sum(axis=1, keepdims=True).astype(jnp.int32)
    return num_det, det_boxes, det_scores, det_classes


if __name__ == "__main__":
    key = jax.random.PRNGKey(0)
    kx, knms = jax.random.split(key)

    # Small but representative: anchors deliberately NOT a multiple of 128 so
    # the padded-tiling path (the realistic YOLOv6 case: A = 3549/8400/25200)
    # is exercised.  anchors >= 110 is required by the ORT_NMS placeholder.
    B, A, NC = 2, 200, 3                       # (batch, anchors, num_classes)
    x = jax.random.uniform(kx, (B, A, 5 + NC), dtype=jnp.float32)

    out = onnx_ort_forward(x, knms)
    out = jax.tree_util.tree_map(jax.block_until_ready, out)

    num_det, det_boxes, det_scores, det_classes = out
    assert num_det.shape == (B, 1)
    assert det_boxes.shape[0] == B and det_boxes.shape[-1] == 4
    assert det_scores.shape == det_classes.shape

    # Sanity: kernel output matches a pure-JAX reference of the module math.
    ref_box = jnp.concatenate(
        [x[..., :2] - 0.5 * x[..., 2:4], x[..., :2] + 0.5 * x[..., 2:4]], axis=-1)
    ref_score = x[..., 5:] * x[..., 4:5]

    box_t, score_t = preprocess(x)
    box_t = jax.block_until_ready(box_t)
    score_t = jax.block_until_ready(score_t)
    assert box_t.shape == (B, 4, A) and score_t.shape == (B, NC, A)
    assert jnp.allclose(jnp.transpose(box_t, (0, 2, 1)), ref_box, atol=1e-5)
    assert jnp.allclose(jnp.transpose(score_t, (0, 2, 1)), ref_score, atol=1e-5)

    # Optional bf16-score variant (halves score writeback traffic); loose tol.
    _, score_bf16 = preprocess(x, score_dtype=jnp.bfloat16)
    score_bf16 = jax.block_until_ready(score_bf16)
    assert jnp.allclose(jnp.transpose(score_bf16.astype(jnp.float32), (0, 2, 1)),
                        ref_score, atol=1e-2, rtol=1e-2)

    print("KERNEL_OK")
</pallas_src>

<mosaic_0001>
module attributes {stable_mosaic.version = 11 : i64} {
  func.func @_preproc_kernel(%arg0: i32, %arg1: i32, %arg2: memref<1x128x8xf32, #tpu.memory_space<vmem>>, %arg3: memref<1x4x128xf32, #tpu.memory_space<vmem>>, %arg4: memref<1x3x128xf32, #tpu.memory_space<vmem>>) attributes {dimension_semantics = [#tpu.dimension_semantics<parallel>, #tpu.dimension_semantics<parallel>], iteration_bounds = array<i64: 2, 2>, scalar_prefetch = 0 : i64, scratch_operands = 0 : i64, tpu.core_type = #tpu.core_type<tc>, window_params = [{transform_indices = @transform_0, window_bounds = array<i64: 1, 128, 8>}, {transform_indices = @transform_1, window_bounds = array<i64: 1, 4, 128>}, {transform_indices = @transform_2, window_bounds = array<i64: 1, 3, 128>}]} {
    %c0 = arith.constant 0 : index
    %c0_0 = arith.constant 0 : index
    %c0_1 = arith.constant 0 : index
    %0 = vector.load %arg2[%c0, %c0_0, %c0_1] : memref<1x128x8xf32, #tpu.memory_space<vmem>>, vector<1x128x8xf32>
    %1 = vector.shape_cast %0 : vector<1x128x8xf32> to vector<128x8xf32>
    %2 = tpu.transpose %1, [1, 0] : vector<128x8xf32> -> vector<8x128xf32>
    %3 = vector.extract_strided_slice %2 {offsets = [0, 0], sizes = [2, 128], strides = [1, 1]} : vector<8x128xf32> to vector<2x128xf32>
    %4 = vector.extract_strided_slice %2 {offsets = [2, 0], sizes = [2, 128], strides = [1, 1]} : vector<8x128xf32> to vector<2x128xf32>
    %cst = arith.constant 5.000000e-01 : f32
    %5 = vector.broadcast %cst : f32 to vector<2x128xf32>
    %6 = arith.mulf %4, %5 : vector<2x128xf32>
    %7 = vector.extract_strided_slice %2 {offsets = [4, 0], sizes = [1, 128], strides = [1, 1]} : vector<8x128xf32> to vector<1x128xf32>
    %8 = vector.extract_strided_slice %2 {offsets = [5, 0], sizes = [3, 128], strides = [1, 1]} : vector<8x128xf32> to vector<3x128xf32>
    %9 = arith.subf %3, %6 : vector<2x128xf32>
    %c0_2 = arith.constant 0 : index
    %c0_3 = arith.constant 0 : index
    %c0_4 = arith.constant 0 : index
    %10 = vector.load %arg3[%c0_2, %c0_3, %c0_4] : memref<1x4x128xf32, #tpu.memory_space<vmem>>, vector<1x2x128xf32>
    %11 = vector.shape_cast %10 : vector<1x2x128xf32> to vector<2x128xf32>
    %12 = vector.shape_cast %9 : vector<2x128xf32> to vector<1x2x128xf32>
    tpu.vector_store %arg3[%c0_2, %c0_3, %c0_4], %12 {strides = array<i32>} : memref<1x4x128xf32, #tpu.memory_space<vmem>>, vector<1x2x128xf32>,
    %13 = arith.addf %3, %6 : vector<2x128xf32>
    %c0_5 = arith.constant 0 : index
    %c2 = arith.constant 2 : index
    %c0_6 = arith.constant 0 : index
    %14 = vector.load %arg3[%c0_5, %c2, %c0_6] : memref<1x4x128xf32, #tpu.memory_space<vmem>>, vector<1x2x128xf32>
    %15 = vector.shape_cast %14 : vector<1x2x128xf32> to vector<2x128xf32>
    %16 = vector.shape_cast %13 : vector<2x128xf32> to vector<1x2x128xf32>
    tpu.vector_store %arg3[%c0_5, %c2, %c0_6], %16 {strides = array<i32>} : memref<1x4x128xf32, #tpu.memory_space<vmem>>, vector<1x2x128xf32>,
    %17 = vector.broadcast %7 : vector<1x128xf32> to vector<3x128xf32>
    %18 = arith.mulf %8, %17 : vector<3x128xf32>
    %c0_7 = arith.constant 0 : index
    %c0_8 = arith.constant 0 : index
    %c0_9 = arith.constant 0 : index
    %19 = vector.load %arg4[%c0_7, %c0_8, %c0_9] : memref<1x3x128xf32, #tpu.memory_space<vmem>>, vector<1x3x128xf32>
    %20 = vector.shape_cast %19 : vector<1x3x128xf32> to vector<3x128xf32>
    %21 = vector.shape_cast %18 : vector<3x128xf32> to vector<1x3x128xf32>
    tpu.vector_store %arg4[%c0_7, %c0_8, %c0_9], %21 {strides = array<i32>} : memref<1x3x128xf32, #tpu.memory_space<vmem>>, vector<1x3x128xf32>,
    return
  }
  func.func @transform_0(%arg0: i32, %arg1: i32) -> (i32, i32, i32) {
    %c0_i32 = arith.constant 0 : i32
    %c0_i32_0 = arith.constant 0 : i32
    return %arg0, %arg1, %c0_i32 : i32, i32, i32
  }
  func.func @transform_1(%arg0: i32, %arg1: i32) -> (i32, i32, i32) {
    %c0_i32 = arith.constant 0 : i32
    %c0_i32_0 = arith.constant 0 : i32
    return %arg0, %c0_i32, %arg1 : i32, i32, i32
  }
  func.func @transform_2(%arg0: i32, %arg1: i32) -> (i32, i32, i32) {
    %c0_i32 = arith.constant 0 : i32
    %c0_i32_0 = arith.constant 0 : i32
    return %arg0, %c0_i32, %arg1 : i32, i32, i32
  }
}

</mosaic_0001>

<bundles_post_ra>
// kernel: tpu_custom_call.1
= control target key start
LH: loop header
LB: loop body
LE: loop exit
PB: predicated region body
PF: predicated region fallthrough
CT: control target
= control target key end

     0   :  { %8 = vsyncpa [#allocation3], 0  ;;  %s758_s0 = inlined_call_operand.vmem [shape: f32[2,256,8], index: 0, kind: input, shape index: {}]   ;;  %s759_s1 = inlined_call_operand.hbm [shape: f32[2,4,256], index: 1, kind: output, shape index: {0}]   ;;  %s760_s2 = inlined_call_operand.vmem [shape: f32[2,3,256], index: 2, kind: output, shape index: {1}]  }
   0x1   :  { %10 = vsyncpa [#allocation3 + $0x1], 0  ;;  %s595_s9 = smov 0   ;;  %s597_s10 = smov 0  }
   0x2   :  { %s599_s11 = smov 0   ;;  %s601_s12 = smov 0  }
   0x3   :  { %s603_s13 = smov 0   ;;  %s605_s14 = smov 0  }
   0x4   :  { %s607_s15 = smov 0   ;;  %s609_s16 = smov 0  }
   0x5 LB: > { %s396_s17 = sadd.s32 4294967295, %s577_s16   ;;  %s397_s18 = sadd.s32 4294967294, %s577_s16   ;;  %s577_s16 = sphi %s609_s16, %s16_s16   ;;  %s573_s15 = sphi %s607_s15, %s769_s15   ;;  %s569_s14 = sphi %s605_s14, %s768_s14   ;;  %s565_s13 = sphi %s603_s13, %s767_s13   ;;  %s561_s12 = sphi %s601_s12, %s766_s12   ;;  %s557_s11 = sphi %s599_s11, %s765_s11   ;;  %s553_s10 = sphi %s597_s10, %s764_s10   ;;  %s549_s9 = sphi %s595_s9, %s763_s9  }
   0x6   : > { %s25_s19 = sadd.s32 1, %s569_s14  ;;  %s28_s20 = sadd.s32 1, %s573_s15 }
   0x7   : > { %p26_p0 = scmp.ge.s32.totalorder %s25_s19, 2  ;;  %p75_p1 = scmp.ne.s32.totalorder %s557_s11, %s553_s10 }
   0x8   : > { %p76_p2 = scmp.eq.s32.totalorder %s396_s17, 3  ;;  %p81_p5 = scmp.ne.s32.totalorder %s553_s10, %s549_s9 }
   0x9   : > { %s771_s19 = smov (%p26_p0, %s25_s19), 0  ;;  %s773_s20 = smov (!%p26_p0, %s28_s20), %s573_s15 }
   0xa   : > { %s61_s21 = ssub.s32 %s569_s14, %s771_s19  ;;  %p646_p3 = por %p76_p2, %p75_p1 }
   0xb   : > { %p30_p4 = scmp.ge.s32.totalorder %s773_s20, 2  ;;  %p82_p6 = scmp.eq.s32.totalorder %s397_s18, 3 }
   0xc   : > { %p400_p7 = scmp.ge.s32.totalorder %s577_s16, 1  ;;  %p141_p9 = scmp.lt.s32.totalorder %s577_s16, 5 }
   0xd   : > { %s775_s20 = smov (%p30_p4, %s773_s20), 0  ;;  %p655_p8 = por %p82_p6, %p81_p5 }
   0xe   : > { %s60_s24 = ssub.s32 %s573_s15, %s775_s20  ;;  %s65_s25 = sadd.s32 1, %s557_s11 }
   0xf   : > { %s62_s26 = sor.u32 %s61_s21, %s60_s24  ;;  %p142_p10 = pnand %p400_p7, %p141_p9 }
  0x10   : > { %p63_p11 = scmp.eq.s32.totalorder %s62_s26, 0  ;;  %s402_s28 = sshll.u32 (!%p142_p10), %s561_s12, 4  ;;  %v249_v16 = vlaneseq (!%p142_p10) }
  0x11   : > { %145 = sbr.rel (%p142_p10) target bundleno = 180 (0xb4), region = 24  ;;  %p176_p12 = scmp.lt.s32.totalorder (!%p142_p10), %s565_s13, 1 }
  0x12   : > { %s664_s27 = scalar_select %p63_p11, %s557_s11, %s65_s25  }
  0x13   : > { %p178_p13 = scmp.lt.s32.totalorder (!%p142_p10), %s402_s28, 31  ;;  %p187_p0 = scmp.lt.s32.totalorder (!%p142_p10), %s561_s12, 1  ;;  %v250_v17 = vshrl.u32 (!%p142_p10), %v249_v16, 7 }
  0x14   : > { %s162_s18 = sand.u32 (!%p142_p10), 1, %s553_s10   ;;  %s408_s25 = sshll.u32 (!%p142_p10), %s565_s13, 1 }
  0x15   : > { %s401_s24 = sshll.u32 (!%p142_p10), %s162_s18, 2  ;;  %v251_v18 = vsub.s32 (!%p142_p10), 4, %v250_v17 }
  0x16   : > { %s164_s6 = scalar_lea.vmem (!%p142_p10), [#allocation2], %s401_s24 }
  0x18   : > { %s669_s29 = scalar_select %p176_p12, %s565_s13, 1 }
  0x19   : > { %s777_s28 = smov (!%p178_p13, %s402_s28), 31 }
  0x1a   : > { %s403_s30 = sshll.u32 %s669_s29, 5  ;;  %s405_s17 = sshll.u32 %s669_s29, 1 }
  0x1b   : > { %s181_s3 = sadd.s32 %s403_s30, %s777_s28  ;;  %s275_s28 = sadd.s32 %s561_s12, %s408_s25 }
  0x1c   : > { %s404_s4 = sshll.u32 %s181_s3, 3  ;;  %s409_s5 = sshll.u32 %s275_s28, 6 }
  0x1d   : > { %s675_s7 = scalar_lea.vmem %s758_s0, %s404_s4 }
  0x1e   : > { %v193_v0 = vld [vmem:[%s675_s7] sm:$0xff]  ;;  %v194_v1 = vld [vmem:[%s675_s7 + $0x8] sm:$0xff]  ;;  %v195_v2 = vld [vmem:[%s675_s7 + $0x10] sm:$0xff]  ;;  %s188_s8 = scalar_select %p187_p0, %s561_s12, 1 }
  0x1f   : > { %209 = vxpose.xlu0.b32.start [1/16] (narrow) %v193_v0, 8  ;;  %v196_v3 = vld [vmem:[%s675_s7 + $0x18] sm:$0xff]  ;;  %v197_v4 = vld [vmem:[%s675_s7 + $0x20] sm:$0xff]  ;;  %v198_v5 = vld [vmem:[%s675_s7 + $0x28] sm:$0xff]  ;;  %s705_s12 = scalar_lea.hbm %s759_s1, %s409_s5 }
  0x20   : > { %v199_v6 = vld [vmem:[%s675_s7 + $0x30] sm:$0xff]  ;;  %v200_v7 = vld [vmem:[%s675_s7 + $0x38] sm:$0xff]  ;;  %v201_v8 = vld [vmem:[%s675_s7 + $0x40] sm:$0xff]  ;;  %s190_s21 = sadd.s32 %s405_s17, %s188_s8  ;;  %s256_s8 = scalar_lea.sflag [#allocation3], %s162_s18 }
  0x21   : > { %v202_v9 = vld [vmem:[%s675_s7 + $0x48] sm:$0xff]  ;;  %v203_v10 = vld [vmem:[%s675_s7 + $0x50] sm:$0xff]  ;;  %v204_v11 = vld [vmem:[%s675_s7 + $0x58] sm:$0xff]  ;;  %s406_s26 = sshll.u32 %s190_s21, 2  ;;  %s579_s21 = smov [#allocation2]  }
  0x22   : > { %v205_v12 = vld [vmem:[%s675_s7 + $0x60] sm:$0xff]  ;;  %v206_v13 = vld [vmem:[%s675_s7 + $0x68] sm:$0xff]  ;;  %v207_v14 = vld [vmem:[%s675_s7 + $0x70] sm:$0xff]  ;;  %s192_s4 = scalar_lea.vmem %s760_s2, %s406_s26  ;;  %s487_s24 = sshll.u32 %s579_s21, 4  ;;  %s488_s24 = int_to_ptr.vmem [resolvable:$false] %s487_s24 }
  0x23   : > { %210 = vxpose.xlu0.b32.cont [2/16] (narrow) %v194_v1, 8  ;;  %v208_v15 = vld [vmem:[%s675_s7 + $0x78] sm:$0xff]  ;;  %s279_s7 = sshll.u32 %s164_s6, 4  ;;  %s489_s25 = scalar_lea.vmem %s488_s24, 128  ;;  %s707_s7 = int_to_ptr.vmem [resolvable:$true] %s279_s7 }
  0x24   : > { %s483_s17 = scalar_lea.vmem %s707_s7, 64  ;;  %p490_p5 = scmp.lt.s32.totalorder %s707_s7, %s488_s24 }
  0x25   : > { %p484_p1 = scmp.ne.s32.totalorder %s707_s7, %s483_s17  ;;  %p491_p6 = scmp.lt.s32.totalorder %s489_s25, %s483_s17 }
  0x27   : > { %211 = vxpose.xlu0.b32.cont [3/16] (narrow) %v195_v2, 8  ;;  %p485_p2 = pnand %p484_p1, %p646_p3  ;;  %p492_p7 = por %p491_p6, %p490_p5 }
  0x29   : > { %p486_p4 = pneg %p485_p2 }
  0x2b   : > { %212 = vxpose.xlu0.b32.cont [4/16] (narrow) %v196_v3, 8  ;;  %p493_p9 = pnand %p492_p7, %p486_p4 }
  0x2f   : > { %213 = vxpose.xlu0.b32.cont [5/16] (narrow) %v197_v4, 8 }
  0x33   : > { %214 = vxpose.xlu0.b32.cont [6/16] (narrow) %v198_v5, 8 }
  0x37   : > { %215 = vxpose.xlu0.b32.cont [7/16] (narrow) %v199_v6, 8 }
  0x3b   : > { %216 = vxpose.xlu0.b32.cont [8/16] (narrow) %v200_v7, 8 }
  0x3f   : > { %217 = vxpose.xlu0.b32.cont [9/16] (narrow) %v201_v8, 8 }
  0x43   : > { %218 = vxpose.xlu0.b32.cont [10/16] (narrow) %v202_v9, 8 }
  0x47   : > { %219 = vxpose.xlu0.b32.cont [11/16] (narrow) %v203_v10, 8 }
  0x4b   : > { %220 = vxpose.xlu0.b32.cont [12/16] (narrow) %v204_v11, 8 }
  0x4f   : > { %221 = vxpose.xlu0.b32.cont [13/16] (narrow) %v205_v12, 8 }
  0x53   : > { %222 = vxpose.xlu0.b32.cont [14/16] (narrow) %v206_v13, 8 }
  0x57   : > { %223 = vxpose.xlu0.b32.cont [15/16] (narrow) %v207_v14, 8 }
  0x5b   : > { %224 = vxpose.xlu0.b32.end [16/16] (narrow) %v208_v15, 8 }
  0x9f   : > { %v225_v19 = vpop.trf.xlu0 }
  0xa0   : > { %v241_v20 = vmul.f32 0.5, %v225_v19  ;;  %v252_v21 = vrot.slane %v225_v19, %v251_v18 }
  0xa2   : > { %v243_v22 = vrot.slane %v241_v20, 2  ;;  %v253_v23 = vmul.f32 %v252_v21, %v225_v19 }
  0xa4   : > { %v245_v24 = vsub.f32 %v225_v19, %v243_v22  ;;  %v247_v25 = vadd.f32 %v243_v22, %v225_v19  ;;  %254 = vst [vmem:[%s192_s4 - $0x5] sm:$0xe0] %v253_v23 }
  0xa6   : > { %246 = vst [vmem:[%s164_s6] sm:$0x3] %v245_v24  ;;  %248 = vst [vmem:[%s164_s6 + $0x2] sm:$0x3] %v247_v25 }
  0xa7   : > { %496 = shalt.err (!%p493_p9)
}
  0xa8   : > { %s497_s18 = scalar_lea.hbm %s705_s12, 64  ;;  %s501_s30 = scalar_lea.hbm %s759_s1, 256 }
  0xa9   : > { %p498_p10 = scmp.ne.s32.totalorder %s705_s12, %s497_s18  ;;  %p502_p13 = scmp.lt.u32.totalorder %s705_s12, %s759_s1 }
  0xaa   : > { %p503_p0 = scmp.lt.u32.totalorder %s501_s30, %s497_s18  ;;  %p505_p2 = scmp.lt.u32.totalorder %s497_s18, %s705_s12 }
  0xab   : > { %p499_p11 = pnand %p498_p10, %p646_p3 }
  0xac   : > { %p504_p1 = por %p503_p0, %p502_p13 }
  0xad   : > { %p500_p12 = pneg %p499_p11 }
  0xae   : > { %p506_p4 = por %p505_p2, %p504_p1 }
  0xb0   : > { %p507_p5 = pnand %p506_p4, %p500_p12 }
  0xb2   : > { %510 = shalt.err (!%p507_p5)
}
  0xb3   : > { %412 = dma.vmem_to_hbm [thread:$0]  (%p646_p3), %s707_s7, 64, %s705_s12, %s256_s8  }
  0xb4 PF: > { %p418_p6 = scmp.ge.s32.totalorder %s577_s16, 2  ;;  %s294_s5 = sand.u32 1, %s549_s9  }
  0xb5   : > { %s295_s6 = scalar_lea.sflag [#allocation3], %s294_s5 }
  0xb6   : > { %p415_p7 = pnand %p418_p6, %p655_p8 }
  0xb8   : > { %544 = dma.done.wait (!%p415_p7), %s295_s6, 64  }
  0xb9   : > { %546 = vsyncadd (!%p415_p7), %s295_s6, 4294967232  ;;  %s16_s16 = sadd.s32 1, %s577_s16   ;;  %s763_s9 = smov %s553_s10 }
  0xba   : > { %p13_p9 = scmp.ge.s32.totalorder %s16_s16, 6   ;;  %s764_s10 = smov %s557_s11 }
  0xbb   : > { %s765_s11 = smov %s664_s27  ;;  %s766_s12 = smov %s569_s14 }
  0xbc   : > { %s767_s13 = smov %s573_s15  ;;  %s768_s14 = smov %s771_s19 }
  0xbd   : > { %s769_s15 = smov %s775_s20  ;;  %15 = sbr.rel (!%p13_p9) target bundleno = 5 (0x5), region = 71 }
  0xc4   :  { %311 = vsyncpa [#allocation3], 1 }
  0xc5   :  { %313 = vsyncpa [#allocation3 + $0x1], 1 }

</bundles_post_ra>
